<compile_context>
chip_gen: v6e
topology: v6e:2x2x1
jax: 0.10.0
libtpu: 0.0.40
codegen_flags: <defaults>
</compile_context>

<pallas_src>
import functools

import jax
import jax.numpy as jnp
from jax.experimental import pallas as pl
from jax.experimental.pallas import tpu as pltpu


def _round_up(x, m):
    return ((x + m - 1) // m) * m


def _vmem_capacity_bytes():
    """Physical VMEM of the local chip; conservative (v7x = 64 MiB) fallback."""
    try:
        return int(pltpu.get_tpu_info().vmem_capacity_bytes)
    except Exception:
        return 64 * 1024 * 1024


def ffencoder_kernel(x_ref, w1_ref, b1_ref, w2_ref, b2_ref, out_ref, acc_ref, *,
                     use_relu):
    """One batch tile x one hidden-dim chunk.

    x_ref  : (bm, D_in)      compute dtype (bf16 by default)
    w1_ref : (D_in, bh)      compute dtype
    b1_ref : (1, bh)         f32
    w2_ref : (bh, D_out_p)   compute dtype
    b2_ref : (1, D_out_p)    f32
    out_ref: (bm, D_out_p)   f32, lane-dense (D_out padded to 128 multiple)
    acc_ref: (bm, D_out_p)   f32 scratch, resident across the K grid axis
    """
    k = pl.program_id(1)

    @pl.when(k == 0)
    def _init():
        acc_ref[...] = jnp.zeros_like(acc_ref)

    # fc1 chunk on the MXU, bias + activation in f32 on the VPU/EUP.
    h = jnp.dot(x_ref[...], w1_ref[...], preferred_element_type=jnp.float32)
    h = h + b1_ref[...]
    h = jnp.maximum(h, 0.0) if use_relu else jnp.tanh(h)

    # fc2 partial: (bm, bh) @ (bh, D_out_p), accumulated in f32.
    acc_ref[...] += jnp.dot(h.astype(w2_ref.dtype), w2_ref[...],
                            preferred_element_type=jnp.float32)

    @pl.when(k == pl.num_programs(1) - 1)
    def _finalize():
        out_ref[...] = (acc_ref[...] + b2_ref[...]).astype(out_ref.dtype)


def _step_vmem_bytes(block_b, block_h, D_in, D_out_p, itemsize, num_k):
    """Per-grid-step VMEM footprint estimate (buffers + scratch + intermediate)."""
    nbuf_w = 1 if num_k == 1 else 2          # K-tiled weights double-buffer
    w = nbuf_w * (D_in + D_out_p) * block_h * itemsize
    bias = nbuf_w * (block_h + D_out_p) * 4
    x_in = 2 * block_b * D_in * itemsize     # x tile is double-buffered
    out = 2 * block_b * D_out_p * 4
    acc = block_b * D_out_p * 4
    hbuf = block_b * block_h * 4             # live f32 intermediate
    return w + bias + x_in + out + acc + hbuf


def _build_call(B, D_in, D_h, D_out_p, block_b, block_h, use_relu,
                single_buffer_weights, vmem_limit_bytes):
    num_b = pl.cdiv(B, block_b)
    num_k = pl.cdiv(D_h, block_h)

    def wspec(shape, imap):
        # Grid-invariant operands don't need double-buffering.
        if single_buffer_weights:
            return pl.BlockSpec(shape, imap, pipeline_mode=pl.Buffered(1))
        return pl.BlockSpec(shape, imap)

    kernel = functools.partial(ffencoder_kernel, use_relu=use_relu)

    return pl.pallas_call(
        kernel,
        out_shape=jax.ShapeDtypeStruct((B, D_out_p), jnp.float32),
        grid=(num_b, num_k),
        in_specs=[
            pl.BlockSpec((block_b, D_in), lambda i, k: (i, 0)),   # x (batch-tiled)
            wspec((D_in, block_h), lambda i, k: (0, k)),          # w1
            wspec((1, block_h), lambda i, k: (0, k)),             # b1
            wspec((block_h, D_out_p), lambda i, k: (k, 0)),       # w2
            wspec((1, D_out_p), lambda i, k: (0, 0)),             # b2
        ],
        out_specs=pl.BlockSpec((block_b, D_out_p), lambda i, k: (i, 0)),
        scratch_shapes=[pltpu.VMEM((block_b, D_out_p), jnp.float32)],
        compiler_params=pltpu.CompilerParams(
            dimension_semantics=("parallel", "arbitrary"),
            vmem_limit_bytes=int(vmem_limit_bytes),
        ),
    )


def ffencoder(x, params, *, actv_type="relu", block_b=None, block_h=None,
              compute_dtype=jnp.bfloat16):
    """x: (B, D_in) f32.  Returns (B, D_out) f32 (same math as the PyTorch module)."""
    B, D_in = x.shape
    D_h = params["w1"].shape[1]
    D_out = params["w2"].shape[1]
    D_out_p = _round_up(D_out, 128)                 # lane-dense output width

    itemsize = jnp.dtype(compute_dtype).itemsize
    vmem = _vmem_capacity_bytes()
    budget = min(int(0.5 * vmem), 96 * 1024 * 1024)  # working-set budget

    # --- hidden-dim (K) chunking: keep the weight working set inside ~2/3 of
    # the budget.  Only split into chunks that evenly divide D_h (multiples of
    # 128), so the last K chunk never touches out-of-range weight rows/cols.
    if block_h is None:
        block_h = D_h
        while ((1 if block_h == D_h else 2)
               * (D_in + D_out_p) * block_h * itemsize > (2 * budget) // 3):
            nxt = block_h // 2
            if nxt < 128 or nxt % 128 != 0 or D_h % nxt != 0:
                break
            block_h = nxt
    num_k = pl.cdiv(D_h, block_h)

    # --- batch tile: big enough to amortize per-step overhead / fill the MXU,
    # >= 2 tiles for moderate B so v7x's second TensorCore gets work.
    if block_b is None:
        cap = 1024 if vmem >= (96 << 20) else 512    # 128-MiB chips vs v7x
        if B <= 8:
            block_b = B
        elif B <= 2 * cap:
            block_b = min(cap, _round_up(pl.cdiv(B, 2), 8))
        else:
            block_b = cap
        while (block_b > 8 and
               _step_vmem_bytes(block_b, block_h, D_in, D_out_p, itemsize, num_k)
               > budget):
            block_b = max(8, _round_up(block_b // 2, 8))

    step_bytes = _step_vmem_bytes(block_b, block_h, D_in, D_out_p, itemsize, num_k)
    vmem_limit = int(step_bytes * 1.5) + (4 << 20)
    vmem_limit = max(32 << 20, min(vmem_limit, int(0.9 * vmem)))

    # --- operand prep.  (In production, store weights pre-transposed, pre-padded
    # and in bf16 so these casts/pads are not repeated per call.)
    x_c = x.astype(compute_dtype)
    w1 = params["w1"].astype(compute_dtype)
    b1 = params["b1"].astype(jnp.float32)
    w2, b2 = params["w2"], params["b2"]
    if D_out_p != D_out:
        pad = D_out_p - D_out
        w2 = jnp.pad(w2, ((0, 0), (0, pad)))
        b2 = jnp.pad(b2, ((0, 0), (0, pad)))
    w2 = w2.astype(compute_dtype)
    b2 = b2.astype(jnp.float32)

    use_relu = (actv_type == "relu")

    def _run(single_buffer_weights):
        call = _build_call(B, D_in, D_h, D_out_p, block_b, block_h, use_relu,
                           single_buffer_weights, vmem_limit)
        return call(x_c, w1, b1, w2, b2)

    try:
        # Weights are grid-invariant only when D_h fits in one chunk.
        out = _run(num_k == 1)
    except Exception:
        if num_k != 1:
            raise
        # Fallback: default double-buffered specs (in case this JAX build
        # rejects pipeline_mode=pl.Buffered(1)).
        out = _run(False)

    return out[:, :D_out]


def init_params(key, input_dim, hidden_dim, output_dim):
    """PyTorch nn.Linear-style init: uniform(-1/sqrt(in_dim), 1/sqrt(in_dim)).

    Weights are stored transposed (in_dim, out_dim); biases as (1, out_dim).
    """
    ks = jax.random.split(key, 4)
    u = lambda k, shape, b: jax.random.uniform(k, shape, jnp.float32, -b, b)
    b1 = 1.0 / (input_dim ** 0.5)
    b2 = 1.0 / (hidden_dim ** 0.5)
    return {
        "w1": u(ks[0], (input_dim, hidden_dim), b1),
        "b1": u(ks[1], (1, hidden_dim), b1),
        "w2": u(ks[2], (hidden_dim, output_dim), b2),
        "b2": u(ks[3], (1, output_dim), b2),
    }


def reference(x, params, actv_type="relu"):
    """Pure-JAX reimplementation of the PyTorch forward for validation."""
    h = x @ params["w1"] + params["b1"]
    h = jnp.maximum(h, 0.0) if actv_type == "relu" else jnp.tanh(h)
    return h @ params["w2"] + params["b2"]


if __name__ == "__main__":
    # Correctness smoke test only (every operand fits one vreg); tune / benchmark
    # block_b / block_h at production dims, not here.
    B, D_IN, D_H, D_OUT = 2, 16, 32, 8   # batch, coverage window, hidden, output

    key = jax.random.PRNGKey(0)
    kx, kp = jax.random.split(key, 2)
    x = jax.random.normal(kx, (B, D_IN), jnp.float32)
    params = init_params(kp, D_IN, D_H, D_OUT)

    ref_relu = reference(x, params, actv_type="relu")
    ref_tanh = reference(x, params, actv_type="tanh")

    # Default bf16 MXU path (loose tolerance per bf16 rounding).
    out = jax.block_until_ready(ffencoder(x, params, actv_type="relu"))
    assert out.shape == (B, D_OUT)
    assert jnp.allclose(out, ref_relu, atol=5e-2, rtol=5e-2), (
        f"bf16 relu max abs err: {jnp.max(jnp.abs(out - ref_relu))}")

    # f32 path (tolerance covers MXU default-precision differences vs XLA).
    out32 = jax.block_until_ready(
        ffencoder(x, params, actv_type="relu", compute_dtype=jnp.float32))
    assert jnp.allclose(out32, ref_relu, atol=2e-2, rtol=2e-2), (
        f"f32 relu max abs err: {jnp.max(jnp.abs(out32 - ref_relu))}")

    # Tanh activation path.
    out_t = jax.block_until_ready(ffencoder(x, params, actv_type="tanh"))
    assert jnp.allclose(out_t, ref_tanh, atol=5e-2, rtol=5e-2), (
        f"bf16 tanh max abs err: {jnp.max(jnp.abs(out_t - ref_tanh))}")

    print("KERNEL_OK")
</pallas_src>

<mosaic_0001>
module attributes {stable_mosaic.version = 11 : i64} {
  func.func @ffencoder_kernel(%arg0: i32, %arg1: i32, %arg2: memref<2x16xbf16, #tpu.memory_space<vmem>>, %arg3: memref<16x32xbf16, #tpu.memory_space<vmem>>, %arg4: memref<1x32xf32, #tpu.memory_space<vmem>>, %arg5: memref<32x128xbf16, #tpu.memory_space<vmem>>, %arg6: memref<1x128xf32, #tpu.memory_space<vmem>>, %arg7: memref<2x128xf32, #tpu.memory_space<vmem>>, %arg8: memref<2x128xf32, #tpu.memory_space<vmem>>) attributes {dimension_semantics = [#tpu.dimension_semantics<parallel>, #tpu.dimension_semantics<arbitrary>], iteration_bounds = array<i64: 1, 1>, scalar_prefetch = 0 : i64, scratch_operands = 1 : i64, tpu.core_type = #tpu.core_type<tc>, window_params = [{transform_indices = @transform_0, window_bounds = array<i64: 2, 16>}, {pipeline_mode = #tpu.pipeline_mode<synchronous>, transform_indices = @transform_1, window_bounds = array<i64: 16, 32>}, {pipeline_mode = #tpu.pipeline_mode<synchronous>, transform_indices = @transform_2, window_bounds = array<i64: 1, 32>}, {pipeline_mode = #tpu.pipeline_mode<synchronous>, transform_indices = @transform_3, window_bounds = array<i64: 32, 128>}, {pipeline_mode = #tpu.pipeline_mode<synchronous>, transform_indices = @transform_4, window_bounds = array<i64: 1, 128>}, {transform_indices = @transform_5, window_bounds = array<i64: 2, 128>}]} {
    %c0_i32 = arith.constant 0 : i32
    %0 = arith.cmpi eq, %arg1, %c0_i32 : i32
    %1 = arith.extui %0 : i1 to i32
    %c0_i32_0 = arith.constant 0 : i32
    %2 = arith.cmpi ne, %1, %c0_i32_0 : i32
    scf.if %2 {
      %cst_16 = arith.constant 0.000000e+00 : f32
      %20 = vector.broadcast %cst_16 : f32 to vector<2x128xf32>
      %c0_17 = arith.constant 0 : index
      %c0_18 = arith.constant 0 : index
      %21 = vector.load %arg8[%c0_17, %c0_18] : memref<2x128xf32, #tpu.memory_space<vmem>>, vector<2x128xf32>
      tpu.vector_store %arg8[%c0_17, %c0_18], %20 {strides = array<i32>} : memref<2x128xf32, #tpu.memory_space<vmem>>, vector<2x128xf32>,
    } else {
    }
    %c0 = arith.constant 0 : index
    %c0_1 = arith.constant 0 : index
    %3 = vector.load %arg2[%c0, %c0_1] : memref<2x16xbf16, #tpu.memory_space<vmem>>, vector<2x16xbf16>
    %c0_2 = arith.constant 0 : index
    %c0_3 = arith.constant 0 : index
    %4 = vector.load %arg3[%c0_2, %c0_3] : memref<16x32xbf16, #tpu.memory_space<vmem>>, vector<16x32xbf16>
    %cst = arith.constant dense<0.000000e+00> : vector<2x32xf32>
    %5 = tpu.matmul %3, %4, %cst {dimension_numbers = #tpu.dot_dimension_numbers<[1], [0], [0], [1], [0, 0, 1, 1], [], []>} : vector<2x16xbf16>, vector<16x32xbf16>, vector<2x32xf32> -> vector<2x32xf32>
    %c0_4 = arith.constant 0 : index
    %c0_5 = arith.constant 0 : index
    %6 = vector.load %arg4[%c0_4, %c0_5] : memref<1x32xf32, #tpu.memory_space<vmem>>, vector<1x32xf32>
    %7 = vector.broadcast %6 : vector<1x32xf32> to vector<2x32xf32>
    %8 = arith.addf %5, %7 : vector<2x32xf32>
    %cst_6 = arith.constant 0.000000e+00 : f32
    %9 = vector.broadcast %cst_6 : f32 to vector<2x32xf32>
    %10 = arith.maximumf %8, %9 : vector<2x32xf32>
    %c0_7 = arith.constant 0 : index
    %c0_8 = arith.constant 0 : index
    %11 = vector.load %arg8[%c0_7, %c0_8] : memref<2x128xf32, #tpu.memory_space<vmem>>, vector<2x128xf32>
    %12 = arith.truncf %10 : vector<2x32xf32> to vector<2x32xbf16>
    %c0_9 = arith.constant 0 : index
    %c0_10 = arith.constant 0 : index
    %13 = vector.load %arg5[%c0_9, %c0_10] : memref<32x128xbf16, #tpu.memory_space<vmem>>, vector<32x128xbf16>
    %cst_11 = arith.constant dense<0.000000e+00> : vector<2x128xf32>
    %14 = tpu.matmul %12, %13, %cst_11 {dimension_numbers = #tpu.dot_dimension_numbers<[1], [0], [0], [1], [0, 0, 1, 1], [], []>} : vector<2x32xbf16>, vector<32x128xbf16>, vector<2x128xf32> -> vector<2x128xf32>
    %15 = arith.addf %11, %14 : vector<2x128xf32>
    %c0_12 = arith.constant 0 : index
    %c0_13 = arith.constant 0 : index
    %16 = vector.load %arg8[%c0_12, %c0_13] : memref<2x128xf32, #tpu.memory_space<vmem>>, vector<2x128xf32>
    tpu.vector_store %arg8[%c0_12, %c0_13], %15 {strides = array<i32>} : memref<2x128xf32, #tpu.memory_space<vmem>>, vector<2x128xf32>,
    %c0_i32_14 = arith.constant 0 : i32
    %17 = arith.cmpi eq, %arg1, %c0_i32_14 : i32
    %18 = arith.extui %17 : i1 to i32
    %c0_i32_15 = arith.constant 0 : i32
    %19 = arith.cmpi ne, %18, %c0_i32_15 : i32
    scf.if %19 {
      %c0_16 = arith.constant 0 : index
      %c0_17 = arith.constant 0 : index
      %20 = vector.load %arg8[%c0_16, %c0_17] : memref<2x128xf32, #tpu.memory_space<vmem>>, vector<2x128xf32>
      %c0_18 = arith.constant 0 : index
      %c0_19 = arith.constant 0 : index
      %21 = vector.load %arg6[%c0_18, %c0_19] : memref<1x128xf32, #tpu.memory_space<vmem>>, vector<1x128xf32>
      %22 = vector.broadcast %21 : vector<1x128xf32> to vector<2x128xf32>
      %23 = arith.addf %20, %22 : vector<2x128xf32>
      %c0_20 = arith.constant 0 : index
      %c0_21 = arith.constant 0 : index
      %24 = vector.load %arg7[%c0_20, %c0_21] : memref<2x128xf32, #tpu.memory_space<vmem>>, vector<2x128xf32>
      tpu.vector_store %arg7[%c0_20, %c0_21], %23 {strides = array<i32>} : memref<2x128xf32, #tpu.memory_space<vmem>>, vector<2x128xf32>,
    } else {
    }
    return
  }
  func.func @transform_0(%arg0: i32, %arg1: i32) -> (i32, i32) {
    %c0_i32 = arith.constant 0 : i32
    %c0_i32_0 = arith.constant 0 : i32
    return %arg0, %c0_i32 : i32, i32
  }
  func.func @transform_1(%arg0: i32, %arg1: i32) -> (i32, i32) {
    %c0_i32 = arith.constant 0 : i32
    %c0_i32_0 = arith.constant 0 : i32
    return %c0_i32, %arg1 : i32, i32
  }
  func.func @transform_2(%arg0: i32, %arg1: i32) -> (i32, i32) {
    %c0_i32 = arith.constant 0 : i32
    %c0_i32_0 = arith.constant 0 : i32
    return %c0_i32, %arg1 : i32, i32
  }
  func.func @transform_3(%arg0: i32, %arg1: i32) -> (i32, i32) {
    %c0_i32 = arith.constant 0 : i32
    %c0_i32_0 = arith.constant 0 : i32
    return %arg1, %c0_i32 : i32, i32
  }
  func.func @transform_4(%arg0: i32, %arg1: i32) -> (i32, i32) {
    %c0_i32 = arith.constant 0 : i32
    %c0_i32_0 = arith.constant 0 : i32
    %c0_i32_1 = arith.constant 0 : i32
    return %c0_i32, %c0_i32_0 : i32, i32
  }
  func.func @transform_5(%arg0: i32, %arg1: i32) -> (i32, i32) {
    %c0_i32 = arith.constant 0 : i32
    %c0_i32_0 = arith.constant 0 : i32
    return %arg0, %c0_i32 : i32, i32
  }
}

module attributes {stable_mosaic.version = 11 : i64} {
  func.func @ffencoder_kernel(%arg0: i32, %arg1: i32, %arg2: memref<2x16xbf16, #tpu.memory_space<vmem>>, %arg3: memref<16x32xbf16, #tpu.memory_space<vmem>>, %arg4: memref<1x32xf32, #tpu.memory_space<vmem>>, %arg5: memref<32x128xbf16, #tpu.memory_space<vmem>>, %arg6: memref<1x128xf32, #tpu.memory_space<vmem>>, %arg7: memref<2x128xf32, #tpu.memory_space<vmem>>, %arg8: memref<2x128xf32, #tpu.memory_space<vmem>>) attributes {dimension_semantics = [#tpu.dimension_semantics<parallel>, #tpu.dimension_semantics<arbitrary>], iteration_bounds = array<i64: 1, 1>, scalar_prefetch = 0 : i64, scratch_operands = 1 : i64, tpu.core_type = #tpu.core_type<tc>, window_params = [{transform_indices = @transform_0, window_bounds = array<i64: 2, 16>}, {transform_indices = @transform_1, window_bounds = array<i64: 16, 32>}, {transform_indices = @transform_2, window_bounds = array<i64: 1, 32>}, {transform_indices = @transform_3, window_bounds = array<i64: 32, 128>}, {pipeline_mode = #tpu.pipeline_mode<synchronous>, transform_indices = @transform_4, window_bounds = array<i64: 1, 128>}, {transform_indices = @transform_5, window_bounds = array<i64: 2, 128>}]} {
    %c0_i32 = arith.constant 0 : i32
    %0 = arith.cmpi eq, %arg1, %c0_i32 : i32
    %1 = arith.extui %0 : i1 to i32
    %c0_i32_0 = arith.constant 0 : i32
    %2 = arith.cmpi ne, %1, %c0_i32_0 : i32
    scf.if %2 {
      %cst_16 = arith.constant 0.000000e+00 : f32
      %20 = vector.broadcast %cst_16 : f32 to vector<2x128xf32>
      %c0_17 = arith.constant 0 : index
      %c0_18 = arith.constant 0 : index
      %21 = vector.load %arg8[%c0_17, %c0_18] : memref<2x128xf32, #tpu.memory_space<vmem>>, vector<2x128xf32>
      tpu.vector_store %arg8[%c0_17, %c0_18], %20 {strides = array<i32>} : memref<2x128xf32, #tpu.memory_space<vmem>>, vector<2x128xf32>,
    } else {
    }
    %c0 = arith.constant 0 : index
    %c0_1 = arith.constant 0 : index
    %3 = vector.load %arg2[%c0, %c0_1] : memref<2x16xbf16, #tpu.memory_space<vmem>>, vector<2x16xbf16>
    %c0_2 = arith.constant 0 : index
    %c0_3 = arith.constant 0 : index
    %4 = vector.load %arg3[%c0_2, %c0_3] : memref<16x32xbf16, #tpu.memory_space<vmem>>, vector<16x32xbf16>
    %cst = arith.constant dense<0.000000e+00> : vector<2x32xf32>
    %5 = tpu.matmul %3, %4, %cst {dimension_numbers = #tpu.dot_dimension_numbers<[1], [0], [0], [1], [0, 0, 1, 1], [], []>} : vector<2x16xbf16>, vector<16x32xbf16>, vector<2x32xf32> -> vector<2x32xf32>
    %c0_4 = arith.constant 0 : index
    %c0_5 = arith.constant 0 : index
    %6 = vector.load %arg4[%c0_4, %c0_5] : memref<1x32xf32, #tpu.memory_space<vmem>>, vector<1x32xf32>
    %7 = vector.broadcast %6 : vector<1x32xf32> to vector<2x32xf32>
    %8 = arith.addf %5, %7 : vector<2x32xf32>
    %cst_6 = arith.constant 0.000000e+00 : f32
    %9 = vector.broadcast %cst_6 : f32 to vector<2x32xf32>
    %10 = arith.maximumf %8, %9 : vector<2x32xf32>
    %c0_7 = arith.constant 0 : index
    %c0_8 = arith.constant 0 : index
    %11 = vector.load %arg8[%c0_7, %c0_8] : memref<2x128xf32, #tpu.memory_space<vmem>>, vector<2x128xf32>
    %12 = arith.truncf %10 : vector<2x32xf32> to vector<2x32xbf16>
    %c0_9 = arith.constant 0 : index
    %c0_10 = arith.constant 0 : index
    %13 = vector.load %arg5[%c0_9, %c0_10] : memref<32x128xbf16, #tpu.memory_space<vmem>>, vector<32x128xbf16>
    %cst_11 = arith.constant dense<0.000000e+00> : vector<2x128xf32>
    %14 = tpu.matmul %12, %13, %cst_11 {dimension_numbers = #tpu.dot_dimension_numbers<[1], [0], [0], [1], [0, 0, 1, 1], [], []>} : vector<2x32xbf16>, vector<32x128xbf16>, vector<2x128xf32> -> vector<2x128xf32>
    %15 = arith.addf %11, %14 : vector<2x128xf32>
    %c0_12 = arith.constant 0 : index
    %c0_13 = arith.constant 0 : index
    %16 = vector.load %arg8[%c0_12, %c0_13] : memref<2x128xf32, #tpu.memory_space<vmem>>, vector<2x128xf32>
    tpu.vector_store %arg8[%c0_12, %c0_13], %15 {strides = array<i32>} : memref<2x128xf32, #tpu.memory_space<vmem>>, vector<2x128xf32>,
    %c0_i32_14 = arith.constant 0 : i32
    %17 = arith.cmpi eq, %arg1, %c0_i32_14 : i32
    %18 = arith.extui %17 : i1 to i32
    %c0_i32_15 = arith.constant 0 : i32
    %19 = arith.cmpi ne, %18, %c0_i32_15 : i32
    scf.if %19 {
      %c0_16 = arith.constant 0 : index
      %c0_17 = arith.constant 0 : index
      %20 = vector.load %arg8[%c0_16, %c0_17] : memref<2x128xf32, #tpu.memory_space<vmem>>, vector<2x128xf32>
      %c0_18 = arith.constant 0 : index
      %c0_19 = arith.constant 0 : index
      %21 = vector.load %arg6[%c0_18, %c0_19] : memref<1x128xf32, #tpu.memory_space<vmem>>, vector<1x128xf32>
      %22 = vector.broadcast %21 : vector<1x128xf32> to vector<2x128xf32>
      %23 = arith.addf %20, %22 : vector<2x128xf32>
      %c0_20 = arith.constant 0 : index
      %c0_21 = arith.constant 0 : index
      %24 = vector.load %arg7[%c0_20, %c0_21] : memref<2x128xf32, #tpu.memory_space<vmem>>, vector<2x128xf32>
      tpu.vector_store %arg7[%c0_20, %c0_21], %23 {strides = array<i32>} : memref<2x128xf32, #tpu.memory_space<vmem>>, vector<2x128xf32>,
    } else {
    }
    return
  }
  func.func @transform_0(%arg0: i32, %arg1: i32) -> (i32, i32) {
    %c0_i32 = arith.constant 0 : i32
    %c0_i32_0 = arith.constant 0 : i32
    return %arg0, %c0_i32 : i32, i32
  }
  func.func @transform_1(%arg0: i32, %arg1: i32) -> (i32, i32) {
    %c0_i32 = arith.constant 0 : i32
    %c0_i32_0 = arith.constant 0 : i32
    return %c0_i32, %arg1 : i32, i32
  }
  func.func @transform_2(%arg0: i32, %arg1: i32) -> (i32, i32) {
    %c0_i32 = arith.constant 0 : i32
    %c0_i32_0 = arith.constant 0 : i32
    return %c0_i32, %arg1 : i32, i32
  }
  func.func @transform_3(%arg0: i32, %arg1: i32) -> (i32, i32) {
    %c0_i32 = arith.constant 0 : i32
    %c0_i32_0 = arith.constant 0 : i32
    return %arg1, %c0_i32 : i32, i32
  }
  func.func @transform_4(%arg0: i32, %arg1: i32) -> (i32, i32) {
    %c0_i32 = arith.constant 0 : i32
    %c0_i32_0 = arith.constant 0 : i32
    %c0_i32_1 = arith.constant 0 : i32
    return %c0_i32, %c0_i32_0 : i32, i32
  }
  func.func @transform_5(%arg0: i32, %arg1: i32) -> (i32, i32) {
    %c0_i32 = arith.constant 0 : i32
    %c0_i32_0 = arith.constant 0 : i32
    return %arg0, %c0_i32 : i32, i32
  }
}

</mosaic_0001>

<bundles_post_ra>
// kernel: tpu_custom_call.1
= control target key start
LH: loop header
LB: loop body
LE: loop exit
PB: predicated region body
PF: predicated region fallthrough
CT: control target
= control target key end

     0   :  { %10 = vsyncpa [#allocation4], 0  ;;  %s399_s0 = inlined_call_operand.hbm [shape: bf16[2,16], index: 0, kind: input, shape index: {}]   ;;  %s400_s1 = inlined_call_operand.hbm [shape: bf16[16,32], index: 1, kind: input, shape index: {}]   ;;  %s401_s2 = inlined_call_operand.vmem [shape: f32[1,32], index: 2, kind: input, shape index: {}]   ;;  %s402_s3 = inlined_call_operand.hbm [shape: bf16[32,128], index: 3, kind: input, shape index: {}]   ;;  %s403_s4 = inlined_call_operand.vmem [shape: f32[1,128], index: 4, kind: input, shape index: {}]   ;;  %s404_s5 = inlined_call_operand.hbm [shape: f32[2,128], index: 5, kind: output, shape index: {}]  }
   0x1   :  { %11 = vsyncpa [#allocation7], 0 }
   0x2   :  { %12 = vsyncpa [#allocation5], 0  ;;  %s343_s18 = smov [#allocation6]  }
   0x3   :  { %s28_s19 = sshll.u32 %s343_s18, 4  ;;  %s29_s19 = int_to_ptr.vmem [resolvable:$true] %s28_s19 }
   0x4   :  { %s265_s20 = scalar_lea.vmem %s29_s19, 128  ;;  %p270_p1 = scmp.lt.s32.totalorder %s29_s19, %s29_s19 }
   0x5   :  { %p266_p0 = scmp.ne.s32.totalorder %s29_s19, %s265_s20  ;;  %p271_p2 = scmp.lt.s32.totalorder %s265_s20, %s265_s20 }
   0x7   :  { %p272_p3 = por %p271_p2, %p270_p1 }
   0x9   :  { %p273_p4 = pnand %p272_p3, %p266_p0 }
   0xb   :  { %276 = shalt.err (!%p273_p4)
}
   0xc   :  { %s344_s21 = smov 64   ;;  %s345_s22 = smov 4  }
   0xd   :  { %34 = dma.hbm_to_vmem [thread:$0]  %s400_s1, 128, %s29_s19, [#allocation7], %s344_s21, %s344_s21, %s345_s22  }
   0xe   :  { %s346_s25 = smov [#allocation3]   ;;  %s347_s27 = smov [#allocation8]  }
   0xf   :  { %s19_s26 = sshll.u32 %s346_s25, 4  ;;  %s42_s28 = sshll.u32 %s347_s27, 4  ;;  %s20_s26 = int_to_ptr.vmem [resolvable:$true] %s19_s26  ;;  %s43_s28 = int_to_ptr.vmem [resolvable:$true] %s42_s28 }
  0x10   :  { %s285_s29 = scalar_lea.vmem %s20_s26, 16  ;;  %s289_s30 = scalar_lea.vmem %s20_s26, 32 }
  0x11   :  { %p286_p5 = scmp.ne.s32.totalorder %s20_s26, %s285_s29  ;;  %p290_p6 = scmp.lt.s32.totalorder %s20_s26, %s20_s26 }
  0x12   :  { %p291_p7 = scmp.lt.s32.totalorder %s289_s30, %s285_s29 }
  0x14   :  { %p292_p8 = por %p291_p7, %p290_p6 }
  0x16   :  { %p293_p9 = pnand %p292_p8, %p286_p5 }
  0x18   :  { %296 = shalt.err (!%p293_p9)
}
  0x19   :  { %22 = dma.hbm_to_vmem [thread:$0]  %s399_s0, 16, %s20_s26, [#allocation4]  }
  0x1a   :  { %s305_s8 = scalar_lea.vmem %s43_s28, 256  ;;  %p310_p11 = scmp.lt.s32.totalorder %s43_s28, %s43_s28 }
  0x1b   :  { %p306_p10 = scmp.ne.s32.totalorder %s43_s28, %s305_s8  ;;  %p311_p12 = scmp.lt.s32.totalorder %s305_s8, %s305_s8 }
  0x1d   :  { %p312_p13 = por %p311_p12, %p310_p11 }
  0x1f   :  { %p313_p0 = pnand %p312_p13, %p306_p10 }
  0x21   :  { %316 = shalt.err (!%p313_p0)
}
  0x22   :  { %48 = dma.hbm_to_vmem [thread:$0]  %s402_s3, 256, %s43_s28, [#allocation7], %s344_s21, %s344_s21, %s345_s22  }
  0x23   :  { %337 = dma.done.wait [#allocation4], 16  }
  0x24   :  { %338 = vsyncadd [#allocation4], 4294967280 }
  0x25   :  { %339 = dma.done.wait [#allocation7], 384  }
  0x26   :  { %340 = vsyncadd [#allocation7], 4294966912  ;;  %v348_v0 = vmov 0.0   ;;  %vm349_vm0 = vmmov 0   ;;  %v254_v1 = vld [vmem:[#allocation6] sm:$0xff]   ;;  %vm82_vm1 = vcmask 130048  }
  0x27   :  { %232 = vmatprep.subr.bf16.mxu0 %v348_v0  ;;  %65 = vst [vmem:[#allocation2] sm:$0x3] %v348_v0  ;;  %234 = vmatprep.mubr.msk.bf16.mxu0 %vm349_vm0, %v348_v0  ;;  %v66_v2 = vld [vmem:[#allocation3] sm:$0x1]  ;;  %v255_v3 = vld [vmem:[#allocation8 + $0x8] sm:$0xff]   ;;  %v256_v4 = vld [vmem:[#allocation8] sm:$0xff]  }
  0x28   :  { %238 = vmatprep.subr.bf16.mxu1 %v348_v0  ;;  %242 = vmatprep.mubr.msk.bf16.mxu1 %vm349_vm0, %v348_v0  ;;  %v220_v5 = vld [vmem:[%s401_s2] ss:$0 sm:$0xff]  ;;  %vm145_vm2 = vcmask 261120   ;;  %s350_s2 = smov [#allocation9]  }
  0x29   :  { %233 = vmatpush3.bf16.msra.mxu0 %v254_v1  ;;  %239 = vmatpush3.bf16.msra.mxu1 %v255_v3  ;;  %v226_v19 = vld [vmem:[%s403_s4] ss:$0 sm:$0xff]  ;;  %s210_s12 = sshll.u32 %s350_s2, 4  ;;  %s211_s12 = int_to_ptr.vmem [resolvable:$true] %s210_s12 }
  0x2a   :  { %240 = vmatprep.subr.bf16.mxu1 %v348_v0  ;;  %s317_s13 = scalar_lea.vmem %s211_s12, 32  ;;  %p322_p2 = scmp.lt.s32.totalorder %s211_s12, %s211_s12 }
  0x2b   :  { %p318_p1 = scmp.ne.s32.totalorder %s211_s12, %s317_s13  ;;  %p323_p3 = scmp.lt.s32.totalorder %s317_s13, %s317_s13 }
  0x2c   :  { %235 = vmatmul.mubr.msk.bf16.vlgmr.msra.gmra.mxu0 %vm82_vm1, %v66_v2 }
  0x2d   :  { %241 = vmatpush3.bf16.msra.mxu1 %v256_v4  ;;  %p324_p4 = por %p323_p3, %p322_p2 }
  0x2e   :  { %v127_v13 = vld [vmem:[#allocation2] sm:$0x3] }
  0x2f   :  { %p325_p5 = pnand %p324_p4, %p318_p1 }
  0xec   :  { %v120_v6 = vpop.f32.mrf.mxu0 }
  0xed   :  { %v121_v7 = vadd.f32 %v220_v5, %v120_v6 }
  0xee   :  { %v236_v8 = vpop.f32.mrf.mxu0 }
  0xef   :  { %v126_v9 = vmax.f32 %v121_v7, 0.0 }
  0xf0   :  { %v123_v10 = vpop.f32.mrf.mxu0 }
  0xf1   :  { %v128_v11 = vpack.c.bf16 %v126_v9, %v126_v9 }
  0xf2   :  { %v237_v12 = vpop.f32.mrf.mxu0 }
  0xf3   :  { %243 = vmatmul.mubr.msk.bf16.vlgmr.msra.gmra.mxu1 %vm145_vm2, %v128_v11 }
 0x1b3   :  { %v183_v14 = vpop.f32.mrf.mxu1 }
 0x1b4   :  { %v189_v15 = vadd.f32 %v183_v14, %v127_v13 }
 0x1b5   :  { %v244_v16 = vpop.f32.mrf.mxu1 }
 0x1b6   :  { %190 = vst [vmem:[#allocation2] sm:$0x3] %v189_v15 }
 0x1b7   :  { %v186_v17 = vpop.f32.mrf.mxu1 }
 0x1b9   :  { %v245_v18 = vpop.f32.mrf.mxu1 }
 0x1bd   :  { %v194_v20 = vld [vmem:[#allocation2] sm:$0x3] }
 0x1be   :  { %v202_v21 = vadd.f32 %v226_v19, %v194_v20 }
 0x1c0   :  { %203 = vst [vmem:[#allocation9] sm:$0x3] %v202_v21 }
 0x1c1   :  { %328 = shalt.err (!%p325_p5)
}
 0x1c2   :  { %213 = dma.vmem_to_hbm [thread:$0]  %s211_s12, 32, %s404_s5, [#allocation5]  }
 0x1c3   :  { %341 = dma.done.wait [#allocation5], 32  }
 0x1c4   :  { %342 = vsyncadd [#allocation5], 4294967264 }
 0x1c5   :  { %217 = vsyncpa [#allocation4], 1 }
 0x1c6   :  { %218 = vsyncpa [#allocation7], 1 }
 0x1c7   :  { %219 = vsyncpa [#allocation5], 1 }

// kernel: tpu_custom_call.1
= control target key start
LH: loop header
LB: loop body
LE: loop exit
PB: predicated region body
PF: predicated region fallthrough
CT: control target
= control target key end

     0   :  { %10 = vsyncpa [#allocation4], 0  ;;  %s399_s0 = inlined_call_operand.hbm [shape: bf16[2,16], index: 0, kind: input, shape index: {}]   ;;  %s400_s1 = inlined_call_operand.hbm [shape: bf16[16,32], index: 1, kind: input, shape index: {}]   ;;  %s401_s2 = inlined_call_operand.vmem [shape: f32[1,32], index: 2, kind: input, shape index: {}]   ;;  %s402_s3 = inlined_call_operand.hbm [shape: bf16[32,128], index: 3, kind: input, shape index: {}]   ;;  %s403_s4 = inlined_call_operand.vmem [shape: f32[1,128], index: 4, kind: input, shape index: {}]   ;;  %s404_s5 = inlined_call_operand.hbm [shape: f32[2,128], index: 5, kind: output, shape index: {}]  }
   0x1   :  { %11 = vsyncpa [#allocation7], 0 }
   0x2   :  { %12 = vsyncpa [#allocation5], 0  ;;  %s343_s18 = smov [#allocation6]  }
   0x3   :  { %s28_s19 = sshll.u32 %s343_s18, 4  ;;  %s29_s19 = int_to_ptr.vmem [resolvable:$true] %s28_s19 }
   0x4   :  { %s265_s20 = scalar_lea.vmem %s29_s19, 128  ;;  %p270_p1 = scmp.lt.s32.totalorder %s29_s19, %s29_s19 }
   0x5   :  { %p266_p0 = scmp.ne.s32.totalorder %s29_s19, %s265_s20  ;;  %p271_p2 = scmp.lt.s32.totalorder %s265_s20, %s265_s20 }
   0x7   :  { %p272_p3 = por %p271_p2, %p270_p1 }
   0x9   :  { %p273_p4 = pnand %p272_p3, %p266_p0 }
   0xb   :  { %276 = shalt.err (!%p273_p4)
}
   0xc   :  { %s344_s21 = smov 64   ;;  %s345_s22 = smov 4  }
   0xd   :  { %34 = dma.hbm_to_vmem [thread:$0]  %s400_s1, 128, %s29_s19, [#allocation7], %s344_s21, %s344_s21, %s345_s22  }
   0xe   :  { %s346_s25 = smov [#allocation3]   ;;  %s347_s27 = smov [#allocation8]  }
   0xf   :  { %s19_s26 = sshll.u32 %s346_s25, 4  ;;  %s42_s28 = sshll.u32 %s347_s27, 4  ;;  %s20_s26 = int_to_ptr.vmem [resolvable:$true] %s19_s26  ;;  %s43_s28 = int_to_ptr.vmem [resolvable:$true] %s42_s28 }
  0x10   :  { %s285_s29 = scalar_lea.vmem %s20_s26, 16  ;;  %s289_s30 = scalar_lea.vmem %s20_s26, 32 }
  0x11   :  { %p286_p5 = scmp.ne.s32.totalorder %s20_s26, %s285_s29  ;;  %p290_p6 = scmp.lt.s32.totalorder %s20_s26, %s20_s26 }
  0x12   :  { %p291_p7 = scmp.lt.s32.totalorder %s289_s30, %s285_s29 }
  0x14   :  { %p292_p8 = por %p291_p7, %p290_p6 }
  0x16   :  { %p293_p9 = pnand %p292_p8, %p286_p5 }
  0x18   :  { %296 = shalt.err (!%p293_p9)
}
  0x19   :  { %22 = dma.hbm_to_vmem [thread:$0]  %s399_s0, 16, %s20_s26, [#allocation4]  }
  0x1a   :  { %s305_s8 = scalar_lea.vmem %s43_s28, 256  ;;  %p310_p11 = scmp.lt.s32.totalorder %s43_s28, %s43_s28 }
  0x1b   :  { %p306_p10 = scmp.ne.s32.totalorder %s43_s28, %s305_s8  ;;  %p311_p12 = scmp.lt.s32.totalorder %s305_s8, %s305_s8 }
  0x1d   :  { %p312_p13 = por %p311_p12, %p310_p11 }
  0x1f   :  { %p313_p0 = pnand %p312_p13, %p306_p10 }
  0x21   :  { %316 = shalt.err (!%p313_p0)
}
  0x22   :  { %48 = dma.hbm_to_vmem [thread:$0]  %s402_s3, 256, %s43_s28, [#allocation7], %s344_s21, %s344_s21, %s345_s22  }
  0x23   :  { %337 = dma.done.wait [#allocation4], 16  }
  0x24   :  { %338 = vsyncadd [#allocation4], 4294967280 }
  0x25   :  { %339 = dma.done.wait [#allocation7], 384  }
  0x26   :  { %340 = vsyncadd [#allocation7], 4294966912  ;;  %v348_v0 = vmov 0.0   ;;  %vm349_vm0 = vmmov 0   ;;  %v254_v1 = vld [vmem:[#allocation6] sm:$0xff]   ;;  %vm82_vm1 = vcmask 130048  }
  0x27   :  { %232 = vmatprep.subr.bf16.mxu0 %v348_v0  ;;  %65 = vst [vmem:[#allocation2] sm:$0x3] %v348_v0  ;;  %234 = vmatprep.mubr.msk.bf16.mxu0 %vm349_vm0, %v348_v0  ;;  %v66_v2 = vld [vmem:[#allocation3] sm:$0x1]  ;;  %v255_v3 = vld [vmem:[#allocation8 + $0x8] sm:$0xff]   ;;  %v256_v4 = vld [vmem:[#allocation8] sm:$0xff]  }
  0x28   :  { %238 = vmatprep.subr.bf16.mxu1 %v348_v0  ;;  %242 = vmatprep.mubr.msk.bf16.mxu1 %vm349_vm0, %v348_v0  ;;  %v220_v5 = vld [vmem:[%s401_s2] ss:$0 sm:$0xff]  ;;  %vm145_vm2 = vcmask 261120   ;;  %s350_s2 = smov [#allocation9]  }
  0x29   :  { %233 = vmatpush3.bf16.msra.mxu0 %v254_v1  ;;  %239 = vmatpush3.bf16.msra.mxu1 %v255_v3  ;;  %v226_v19 = vld [vmem:[%s403_s4] ss:$0 sm:$0xff]  ;;  %s210_s12 = sshll.u32 %s350_s2, 4  ;;  %s211_s12 = int_to_ptr.vmem [resolvable:$true] %s210_s12 }
  0x2a   :  { %240 = vmatprep.subr.bf16.mxu1 %v348_v0  ;;  %s317_s13 = scalar_lea.vmem %s211_s12, 32  ;;  %p322_p2 = scmp.lt.s32.totalorder %s211_s12, %s211_s12 }
  0x2b   :  { %p318_p1 = scmp.ne.s32.totalorder %s211_s12, %s317_s13  ;;  %p323_p3 = scmp.lt.s32.totalorder %s317_s13, %s317_s13 }
  0x2c   :  { %235 = vmatmul.mubr.msk.bf16.vlgmr.msra.gmra.mxu0 %vm82_vm1, %v66_v2 }
  0x2d   :  { %241 = vmatpush3.bf16.msra.mxu1 %v256_v4  ;;  %p324_p4 = por %p323_p3, %p322_p2 }
  0x2e   :  { %v127_v13 = vld [vmem:[#allocation2] sm:$0x3] }
  0x2f   :  { %p325_p5 = pnand %p324_p4, %p318_p1 }
  0xec   :  { %v120_v6 = vpop.f32.mrf.mxu0 }
  0xed   :  { %v121_v7 = vadd.f32 %v220_v5, %v120_v6 }
  0xee   :  { %v236_v8 = vpop.f32.mrf.mxu0 }
  0xef   :  { %v126_v9 = vmax.f32 %v121_v7, 0.0 }
  0xf0   :  { %v123_v10 = vpop.f32.mrf.mxu0 }
  0xf1   :  { %v128_v11 = vpack.c.bf16 %v126_v9, %v126_v9 }
  0xf2   :  { %v237_v12 = vpop.f32.mrf.mxu0 }
  0xf3   :  { %243 = vmatmul.mubr.msk.bf16.vlgmr.msra.gmra.mxu1 %vm145_vm2, %v128_v11 }
 0x1b3   :  { %v183_v14 = vpop.f32.mrf.mxu1 }
 0x1b4   :  { %v189_v15 = vadd.f32 %v183_v14, %v127_v13 }
 0x1b5   :  { %v244_v16 = vpop.f32.mrf.mxu1 }
 0x1b6   :  { %190 = vst [vmem:[#allocation2] sm:$0x3] %v189_v15 }
 0x1b7   :  { %v186_v17 = vpop.f32.mrf.mxu1 }
 0x1b9   :  { %v245_v18 = vpop.f32.mrf.mxu1 }
 0x1bd   :  { %v194_v20 = vld [vmem:[#allocation2] sm:$0x3] }
 0x1be   :  { %v202_v21 = vadd.f32 %v226_v19, %v194_v20 }
 0x1c0   :  { %203 = vst [vmem:[#allocation9] sm:$0x3] %v202_v21 }
 0x1c1   :  { %328 = shalt.err (!%p325_p5)
}
 0x1c2   :  { %213 = dma.vmem_to_hbm [thread:$0]  %s211_s12, 32, %s404_s5, [#allocation5]  }
 0x1c3   :  { %341 = dma.done.wait [#allocation5], 32  }
 0x1c4   :  { %342 = vsyncadd [#allocation5], 4294967264 }
 0x1c5   :  { %217 = vsyncpa [#allocation4], 1 }
 0x1c6   :  { %218 = vsyncpa [#allocation7], 1 }
 0x1c7   :  { %219 = vsyncpa [#allocation5], 1 }

</bundles_post_ra>
